<compile_context>
chip_gen: v7x
topology: tpu7x:2x2x1
jax: 0.10.0
libtpu: 0.0.40
codegen_flags: <defaults>
</compile_context>

<pallas_src>
import functools

import jax
import jax.numpy as jnp
from jax.experimental import pallas as pl
from jax.experimental.pallas import tpu as pltpu


# ----------------------------------------------------------------------------
# Kernel 1: fused matmul + bias + ReLU  (feature-extraction conv via im2col),
#           tiled over rows for pipelining.
# ----------------------------------------------------------------------------
def _matmul_bias_relu_kernel(x_ref, w_ref, b_ref, o_ref):
    o_ref[...] = jnp.maximum(
        jnp.dot(x_ref[...], w_ref[...], preferred_element_type=jnp.float32)
        + b_ref[...],
        0.0,
    )


def conv3x3_relu(x, w_mat, bias, tile_m=512):
    """x: [N, H, W, Cin] NHWC, w_mat: [9*Cin, Cout], bias: [Cout]. 3x3, pad=1."""
    N, H, W, Cin = x.shape
    Cout = w_mat.shape[1]
    xp = jnp.pad(x, ((0, 0), (1, 1), (1, 1), (0, 0)))
    cols = [xp[:, dy:dy + H, dx:dx + W, :] for dy in range(3) for dx in range(3)]
    xcol = jnp.concatenate(cols, axis=-1).reshape(N * H * W, 9 * Cin)

    M = N * H * W
    tm = M if M < tile_m else tile_m           # tm is either full dim or mult of 8
    grid = (pl.cdiv(M, tm),)

    out = pl.pallas_call(
        _matmul_bias_relu_kernel,
        out_shape=jax.ShapeDtypeStruct((M, Cout), jnp.float32),
        grid_spec=pltpu.PrefetchScalarGridSpec(
            num_scalar_prefetch=0,
            grid=grid,
            in_specs=[
                pl.BlockSpec((tm, 9 * Cin), lambda i: (i, 0)),
                pl.BlockSpec((9 * Cin, Cout), lambda i: (0, 0)),
                pl.BlockSpec((1, Cout), lambda i: (0, 0)),
            ],
            out_specs=pl.BlockSpec((tm, Cout), lambda i: (i, 0)),
        ),
        compiler_params=pltpu.CompilerParams(
            dimension_semantics=("parallel",),
            vmem_limit_bytes=32 * 1024 * 1024),
    )(xcol, w_mat, bias.reshape(1, Cout))
    return out.reshape(N, H, W, Cout)


# ----------------------------------------------------------------------------
# Kernel 2: variance cost (from Σf, Σf²) + in-kernel hint modulation +
#           per-pixel ConvGRU regularization + online soft-argmin over depth.
#           Layout: channels on sublanes, pixels on lanes (lane-dense).
# ----------------------------------------------------------------------------
def _vpu_matvec(w, x):
    """w: [G, K], x: [K, N] -> [G, N] via VPU broadcast-MACs (K is tiny)."""
    acc = w[:, 0:1] * x[0:1, :]
    for k in range(1, w.shape[1]):
        acc = acc + w[:, k:k + 1] * x[k:k + 1, :]
    return acc


def _cost_reg_kernel(depth_ref,                 # SMEM [B, D]
                     sumf_ref, sumf2_ref,       # VMEM [C, HWt] bf16
                     hint_ref, valid_ref,       # VMEM [1, HWt] f32
                     wx_ref, wh_ref, bg_ref, wo_ref, bo_ref,
                     depth_out, conf_out,       # VMEM [1, HWt] f32
                     h_sc, m_sc, l_sc, acc_sc,  # scratch
                     *, num_views):
    b = pl.program_id(0)
    d = pl.program_id(2)
    nd = pl.num_programs(2)

    @pl.when(d == 0)
    def _():
        h_sc[...] = jnp.zeros(h_sc.shape, jnp.float32)
        m_sc[...] = jnp.full(m_sc.shape, -1e30, jnp.float32)
        l_sc[...] = jnp.zeros(l_sc.shape, jnp.float32)
        acc_sc[...] = jnp.zeros(acc_sc.shape, jnp.float32)

    # --- variance cost over views from Σf / Σf² (bf16 -> f32 upcast) ---
    inv_v = 1.0 / float(num_views)
    sf = sumf_ref[...].astype(jnp.float32)       # [C, HWt]
    sf2 = sumf2_ref[...].astype(jnp.float32)
    mean = sf * inv_v
    cost = sf2 * inv_v - mean * mean             # [C, HWt]

    # --- guided-hints modulation (computed in-kernel, EUP exp) ---
    dval = depth_ref[b, d]                       # scalar depth hypothesis
    gauss = jnp.exp(-jnp.square(dval - hint_ref[...]) * (1.0 / (2.0 * 0.1 * 0.1)))
    mod = 1.0 + 10.0 * valid_ref[...] * gauss    # [1, HWt]
    cost = cost * mod                            # sublane broadcast

    # --- per-pixel ConvGRU update (1x1 gates as VPU broadcast-MACs) ---
    h = h_sc[...]                                # [Ch, HWt]
    ch = h.shape[0]
    gx = _vpu_matvec(wx_ref[...], cost) + bg_ref[...]   # [3Ch, HWt]
    gh = _vpu_matvec(wh_ref[...], h)                    # [3Ch, HWt]
    z = jax.nn.sigmoid(gx[:ch] + gh[:ch])
    r = jax.nn.sigmoid(gx[ch:2 * ch] + gh[ch:2 * ch])
    n = jnp.tanh(gx[2 * ch:] + r * gh[2 * ch:])
    h_new = (1.0 - z) * n + z * h
    h_sc[...] = h_new

    # --- per-depth score + online softmax / expected depth ---
    logit = jnp.sum(h_new * wo_ref[...], axis=0, keepdims=True) + bo_ref[...]  # [1, HWt]

    m_prev = m_sc[...]
    m_new = jnp.maximum(m_prev, logit)
    alpha = jnp.exp(m_prev - m_new)
    p = jnp.exp(logit - m_new)
    l_sc[...] = alpha * l_sc[...] + p
    acc_sc[...] = alpha * acc_sc[...] + p * dval
    m_sc[...] = m_new

    @pl.when(d == nd - 1)
    def _():
        inv_l = pl.reciprocal(l_sc[...], approx=True)
        depth_out[...] = acc_sc[...] * inv_l      # soft-argmin depth
        conf_out[...] = inv_l                     # max softmax prob = 1 / l


def cost_regularization(sum_f, sum_f2, hints2, valid2, depth_values,
                        num_views, params):
    """sum_f/sum_f2: [B, D, C, HW] bf16, hints2/valid2: [B, 1, HW] f32."""
    B, D, C, HW = sum_f.shape
    Ch = params["gru_wh"].shape[1]

    # HW tile: lane-dense, sized well under v7x's 64 MiB VMEM even with
    # double-buffering (2 inputs * 2 bufs * C*hw_tile*2B is a few hundred KiB).
    hw_tile = HW if HW <= 2048 else 2048
    n_t = pl.cdiv(HW, hw_tile)

    kernel = functools.partial(_cost_reg_kernel, num_views=num_views)

    depth_out, conf_out = pl.pallas_call(
        kernel,
        out_shape=(
            jax.ShapeDtypeStruct((B, 1, HW), jnp.float32),
            jax.ShapeDtypeStruct((B, 1, HW), jnp.float32),
        ),
        grid_spec=pltpu.PrefetchScalarGridSpec(
            num_scalar_prefetch=0,
            grid=(B, n_t, D),                    # D innermost (reduction)
            in_specs=[
                pl.BlockSpec(memory_space=pltpu.MemorySpace.SMEM),         # depth_values
                pl.BlockSpec((None, None, C, hw_tile), lambda b, t, d: (b, d, 0, t)),
                pl.BlockSpec((None, None, C, hw_tile), lambda b, t, d: (b, d, 0, t)),
                pl.BlockSpec((None, 1, hw_tile), lambda b, t, d: (b, 0, t)),  # hints
                pl.BlockSpec((None, 1, hw_tile), lambda b, t, d: (b, 0, t)),  # validhints
                pl.BlockSpec((3 * Ch, C), lambda b, t, d: (0, 0)),            # gru_wx
                pl.BlockSpec((3 * Ch, Ch), lambda b, t, d: (0, 0)),           # gru_wh
                pl.BlockSpec((3 * Ch, 1), lambda b, t, d: (0, 0)),            # gru_b
                pl.BlockSpec((Ch, 1), lambda b, t, d: (0, 0)),                # w_out
                pl.BlockSpec((1, 1), lambda b, t, d: (0, 0)),                 # b_out
            ],
            out_specs=[
                pl.BlockSpec((None, 1, hw_tile), lambda b, t, d: (b, 0, t)),
                pl.BlockSpec((None, 1, hw_tile), lambda b, t, d: (b, 0, t)),
            ],
            scratch_shapes=[
                pltpu.VMEM((Ch, hw_tile), jnp.float32),   # GRU hidden state
                pltpu.VMEM((1, hw_tile), jnp.float32),    # running max
                pltpu.VMEM((1, hw_tile), jnp.float32),    # running denom
                pltpu.VMEM((1, hw_tile), jnp.float32),    # running depth numerator
            ],
        ),
        compiler_params=pltpu.CompilerParams(
            dimension_semantics=("parallel", "parallel", "arbitrary"),
            vmem_limit_bytes=32 * 1024 * 1024),
    )(depth_values, sum_f, sum_f2, hints2, valid2,
      params["gru_wx"], params["gru_wh"], params["gru_b"],
      params["w_out"], params["b_out"])
    return depth_out[:, 0], conf_out[:, 0]        # [B, HW] each


# ----------------------------------------------------------------------------
# Plain-JAX glue: homography warping (bilinear grid_sample-style gather).
# TODO(synk): data-dependent bilinear gather kept in plain JAX.
# ----------------------------------------------------------------------------
def warp_one(src_feat, T, depth_vals):
    """src_feat: [H, W, C], T: [4, 4] (src_proj @ inv(ref_proj)), depth_vals: [D]."""
    H, W, C = src_feat.shape
    yy, xx = jnp.meshgrid(jnp.arange(H, dtype=jnp.float32),
                          jnp.arange(W, dtype=jnp.float32), indexing="ij")
    pix = jnp.stack([xx.ravel(), yy.ravel(),
                     jnp.ones(H * W, jnp.float32)], axis=0)            # [3, HW]
    R, t = T[:3, :3], T[:3, 3:4]
    rot = R @ pix                                                       # [3, HW]
    xyz = rot[None, :, :] * depth_vals[:, None, None] + t[None, :, :]   # [D, 3, HW]
    z = jnp.maximum(xyz[:, 2], 1e-6)
    u, v = xyz[:, 0] / z, xyz[:, 1] / z
    u0, v0 = jnp.floor(u), jnp.floor(v)

    def gather(vi, ui):
        valid = ((ui >= 0) & (ui <= W - 1) & (vi >= 0) & (vi <= H - 1)).astype(jnp.float32)
        uc = jnp.clip(ui, 0, W - 1).astype(jnp.int32)
        vc = jnp.clip(vi, 0, H - 1).astype(jnp.int32)
        return src_feat[vc, uc] * valid[..., None]                      # [D, HW, C]

    wu1, wv1 = u - u0, v - v0
    wu0, wv0 = 1.0 - wu1, 1.0 - wv1
    return (gather(v0, u0) * (wv0 * wu0)[..., None]
            + gather(v0, u0 + 1) * (wv0 * wu1)[..., None]
            + gather(v0 + 1, u0) * (wv1 * wu0)[..., None]
            + gather(v0 + 1, u0 + 1) * (wv1 * wu1)[..., None])          # [D, HW, C]


# ----------------------------------------------------------------------------
# The model (D2HCRMVSNet-style forward) and the NetBuilder wrapper.
# ----------------------------------------------------------------------------
def d2hc_rmvsnet(params, imgs, proj_mats, depth_values, hints, validhints):
    B, V, _, H, W = imgs.shape
    D = depth_values.shape[1]

    imgs_nhwc = jnp.transpose(imgs, (0, 1, 3, 4, 2)).astype(jnp.float32)   # [B,V,H,W,3]

    # 1) feature extraction (tiled/pipelined Pallas matmul hot path)
    x = imgs_nhwc.reshape(B * V, H, W, 3)
    f = conv3x3_relu(x, params["w1"], params["b1"])
    f = conv3x3_relu(f, params["w2"], params["b2"])
    C = f.shape[-1]
    feats = f.reshape(B, V, H, W, C)

    # 2) compose projection matrices: proj[:3,:4] = K[:3,:3] @ E[:3,:4]
    extr, intr = proj_mats[:, :, 0], proj_mats[:, :, 1]
    proj = extr.at[:, :, :3, :4].set(
        jnp.einsum("bvij,bvjk->bvik", intr[:, :, :3, :3], extr[:, :, :3, :4]))
    ref_proj_inv = jnp.linalg.inv(proj[:, 0])                              # [B,4,4]

    # 3) warp source features and accumulate Σf / Σf² over views (glue).
    #    Only two [B, D, C, HW] bf16 volumes reach the Pallas kernel.
    HW = H * W
    sum_f_list, sum_f2_list = [], []
    for b in range(B):
        ref_feat = feats[b, 0].reshape(HW, C)
        ref_b = jnp.broadcast_to(ref_feat[None], (D, HW, C))
        s = ref_b
        s2 = ref_b * ref_b
        for v in range(1, V):
            T = proj[b, v] @ ref_proj_inv[b]
            wv = warp_one(feats[b, v], T, depth_values[b])                 # [D, HW, C]
            s = s + wv
            s2 = s2 + wv * wv
        sum_f_list.append(jnp.swapaxes(s, 1, 2))                           # [D, C, HW]
        sum_f2_list.append(jnp.swapaxes(s2, 1, 2))
    sum_f = jnp.stack(sum_f_list, axis=0).astype(jnp.bfloat16)             # [B, D, C, HW]
    sum_f2 = jnp.stack(sum_f2_list, axis=0).astype(jnp.bfloat16)

    # 4) guided hints (modulation itself is computed inside the kernel)
    if hints is not None:
        hints2 = hints.reshape(B, 1, HW).astype(jnp.float32)
        valid2 = validhints.reshape(B, 1, HW).astype(jnp.float32)
    else:
        hints2 = jnp.zeros((B, 1, HW), jnp.float32)
        valid2 = jnp.zeros((B, 1, HW), jnp.float32)

    # 5) recurrent cost regularization + soft-argmin (Pallas hot path)
    depth, conf = cost_regularization(sum_f, sum_f2, hints2, valid2,
                                      depth_values, V, params)
    return {
        "depth": depth.reshape(B, H, W),
        "photometric_confidence": conf.reshape(B, H, W),
    }


def net_builder_forward(params, batch):
    """Mirrors NetBuilder.forward(batch)."""
    hints, validhints = None, None
    if "hints" in batch:
        hints = batch["hints"]
        validhints = (hints > 0).astype(jnp.float32)
    return d2hc_rmvsnet(params,
                        batch["imgs"]["stage_2"],
                        batch["proj_matrices"]["stage_2"],
                        batch["depth_values"],
                        hints, validhints)


# ----------------------------------------------------------------------------
# Deterministic parameter init + example inputs.
# ----------------------------------------------------------------------------
def init_params(key, c_feat=8, c_hid=8):
    ks = jax.random.split(key, 8)
    p = {
        "w1": 0.1 * jax.random.normal(ks[0], (9 * 3, c_feat), jnp.float32),
        "b1": jnp.zeros((c_feat,), jnp.float32),
        "w2": 0.1 * jax.random.normal(ks[1], (9 * c_feat, c_feat), jnp.float32),
        "b2": jnp.zeros((c_feat,), jnp.float32),
        # GRU weights in channels-on-sublanes layout: [3*Ch, Cin] / [3*Ch, Ch].
        "gru_wx": 0.2 * jax.random.normal(ks[2], (3 * c_hid, c_feat), jnp.float32),
        "gru_wh": 0.2 * jax.random.normal(ks[3], (3 * c_hid, c_hid), jnp.float32),
        "gru_b": jnp.zeros((3 * c_hid, 1), jnp.float32),
        "w_out": 0.5 * jax.random.normal(ks[4], (c_hid, 1), jnp.float32),
        "b_out": jnp.zeros((1, 1), jnp.float32),
    }
    return p


if __name__ == "__main__":
    key = jax.random.PRNGKey(0)
    B, V, H, W, D = 2, 3, 16, 16, 8

    k_img, k_hint, k_mask, k_par = jax.random.split(key, 4)
    imgs = jax.random.uniform(k_img, (B, V, 3, H, W), jnp.float32)         # NCHW per view

    # intrinsics / extrinsics (4x4 each), stage_2 convention [B, V, 2, 4, 4]
    focal = float(W)
    K = jnp.array([[focal, 0.0, W / 2.0, 0.0],
                   [0.0, focal, H / 2.0, 0.0],
                   [0.0, 0.0, 1.0, 0.0],
                   [0.0, 0.0, 0.0, 1.0]], jnp.float32)
    extrs = []
    for v in range(V):
        E = jnp.eye(4, dtype=jnp.float32).at[0, 3].set(0.1 * v)            # small x-baseline
        extrs.append(E)
    extr = jnp.stack(extrs, axis=0)                                         # [V,4,4]
    proj = jnp.stack([jnp.stack([extr, jnp.broadcast_to(K, (V, 4, 4))], axis=1)] * B, axis=0)
    # proj: [B, V, 2, 4, 4]  (index 0 = extrinsics, index 1 = intrinsics)

    depth_values = jnp.broadcast_to(
        jnp.linspace(1.0, 2.0, D, dtype=jnp.float32)[None], (B, D))

    hint_depth = jax.random.uniform(k_hint, (B, 1, H, W), jnp.float32, 1.0, 2.0)
    hint_mask = (jax.random.uniform(k_mask, (B, 1, H, W)) < 0.2).astype(jnp.float32)
    hints = hint_depth * hint_mask                                          # 0 where no hint

    params = init_params(k_par)

    batch = {
        "imgs": {"stage_2": imgs},
        "proj_matrices": {"stage_2": proj},
        "depth_values": depth_values,
        "hints": hints,
    }

    out = net_builder_forward(params, batch)
    jax.block_until_ready(out)

    assert out["depth"].shape == (B, H, W)
    assert out["photometric_confidence"].shape == (B, H, W)
    assert bool(jnp.all(jnp.isfinite(out["depth"])))
    assert bool(jnp.all(jnp.isfinite(out["photometric_confidence"])))
    print("KERNEL_OK")
</pallas_src>

<mosaic_0001>
module attributes {stable_mosaic.version = 11 : i64} {
  func.func @_matmul_bias_relu_kernel(%arg0: i32, %arg1: memref<512x27xf32, #tpu.memory_space<vmem>>, %arg2: memref<27x8xf32, #tpu.memory_space<vmem>>, %arg3: memref<1x8xf32, #tpu.memory_space<vmem>>, %arg4: memref<512x8xf32, #tpu.memory_space<vmem>>) attributes {dimension_semantics = [#tpu.dimension_semantics<parallel>], iteration_bounds = array<i64: 3>, scalar_prefetch = 0 : i64, scratch_operands = 0 : i64, tpu.core_type = #tpu.core_type<tc>, window_params = [{transform_indices = @transform_0, window_bounds = array<i64: 512, 27>}, {pipeline_mode = #tpu.pipeline_mode<synchronous>, transform_indices = @transform_1, window_bounds = array<i64: 27, 8>}, {pipeline_mode = #tpu.pipeline_mode<synchronous>, transform_indices = @transform_2, window_bounds = array<i64: 1, 8>}, {transform_indices = @transform_3, window_bounds = array<i64: 512, 8>}]} {
    %c0 = arith.constant 0 : index
    %c0_0 = arith.constant 0 : index
    %0 = vector.load %arg1[%c0, %c0_0] : memref<512x27xf32, #tpu.memory_space<vmem>>, vector<512x27xf32>
    %c0_1 = arith.constant 0 : index
    %c0_2 = arith.constant 0 : index
    %1 = vector.load %arg2[%c0_1, %c0_2] : memref<27x8xf32, #tpu.memory_space<vmem>>, vector<27x8xf32>
    %cst = arith.constant dense<0.000000e+00> : vector<512x8xf32>
    %2 = tpu.matmul %0, %1, %cst {dimension_numbers = #tpu.dot_dimension_numbers<[1], [0], [0], [1], [0, 0, 1, 1], [], []>} : vector<512x27xf32>, vector<27x8xf32>, vector<512x8xf32> -> vector<512x8xf32>
    %c0_3 = arith.constant 0 : index
    %c0_4 = arith.constant 0 : index
    %3 = vector.load %arg3[%c0_3, %c0_4] : memref<1x8xf32, #tpu.memory_space<vmem>>, vector<1x8xf32>
    %4 = vector.broadcast %3 : vector<1x8xf32> to vector<512x8xf32>
    %5 = arith.addf %2, %4 : vector<512x8xf32>
    %cst_5 = arith.constant 0.000000e+00 : f32
    %6 = vector.broadcast %cst_5 : f32 to vector<512x8xf32>
    %7 = arith.maximumf %5, %6 : vector<512x8xf32>
    %c0_6 = arith.constant 0 : index
    %c0_7 = arith.constant 0 : index
    %8 = vector.load %arg4[%c0_6, %c0_7] : memref<512x8xf32, #tpu.memory_space<vmem>>, vector<512x8xf32>
    tpu.vector_store %arg4[%c0_6, %c0_7], %7 {strides = array<i32>} : memref<512x8xf32, #tpu.memory_space<vmem>>, vector<512x8xf32>,
    return
  }
  func.func @transform_0(%arg0: i32) -> (i32, i32) {
    %c0_i32 = arith.constant 0 : i32
    %c0_i32_0 = arith.constant 0 : i32
    return %arg0, %c0_i32 : i32, i32
  }
  func.func @transform_1(%arg0: i32) -> (i32, i32) {
    %c0_i32 = arith.constant 0 : i32
    %c0_i32_0 = arith.constant 0 : i32
    %c0_i32_1 = arith.constant 0 : i32
    return %c0_i32, %c0_i32_0 : i32, i32
  }
  func.func @transform_2(%arg0: i32) -> (i32, i32) {
    %c0_i32 = arith.constant 0 : i32
    %c0_i32_0 = arith.constant 0 : i32
    %c0_i32_1 = arith.constant 0 : i32
    return %c0_i32, %c0_i32_0 : i32, i32
  }
  func.func @transform_3(%arg0: i32) -> (i32, i32) {
    %c0_i32 = arith.constant 0 : i32
    %c0_i32_0 = arith.constant 0 : i32
    return %arg0, %c0_i32 : i32, i32
  }
}

</mosaic_0001>

<bundles_post_ra>
// kernel: tpu_custom_call.1
= control target key start
LH: loop header
LB: loop body
LE: loop exit
PB: predicated region body
PF: predicated region fallthrough
CT: control target
= control target key end

     0   :  { %s1317_s12 = smov 0   ;;  %s1682_s0 = inlined_call_operand.vmem [shape: f32[1536,27], index: 0, kind: input, shape index: {}]   ;;  %s1683_s1 = inlined_call_operand.vmem [shape: f32[27,8], index: 1, kind: input, shape index: {}]   ;;  %s1684_s2 = inlined_call_operand.vmem [shape: f32[1,8], index: 2, kind: input, shape index: {}]   ;;  %s1685_s3 = inlined_call_operand.vmem [shape: f32[1536,8], index: 3, kind: output, shape index: {}]  }
   0x1 LB: > { %s1016_s13 = sadd.s32 4294967295, %s1294_s12   ;;  %p1020_p0 = scmp.ge.s32.totalorder %s1294_s12, 1  ;;  %s1294_s12 = sphi %s1317_s12, %s13_s12  }
   0x2   : > { %p138_p1 = scmp.lt.s32.totalorder %s1294_s12, 4 }
   0x4   : > { %p139_p2 = pnand %p1020_p0, %p138_p1 }
   0x5   : > { %v238_v0 = vld [vmem:[%s1683_s1] sm:$0xff] (!%p139_p2)  ;;  %v239_v1 = vld [vmem:[%s1683_s1 + $0x8] sm:$0xff] (!%p139_p2)  ;;  %v240_v2 = vld [vmem:[%s1683_s1 + $0x10] sm:$0xff] (!%p139_p2)  ;;  %vm442_vm0 = vcmask (!%p139_p2), 1042432   ;;  %s1021_s20 = sshll.u32 (!%p139_p2), %s1016_s13, 6  ;;  %vm1296_vm1 = vmmov (!%p139_p2), 1  }
   0x6   : > { %142 = sbr.rel (%p139_p2) target bundleno = 297 (0x129), region = 32  ;;  %v1265_v3 = vpack.c.bf16 (!%p139_p2), %v239_v1, %v238_v0  ;;  %v241_v4 = vld [vmem:[%s1683_s1 + $0x18] sm:$0x7] (!%p139_p2)  ;;  %p163_p3 = scmp.lt.s32.totalorder (!%p139_p2), %s1021_s20, 191  ;;  %vm1270_vm2 = vmpackc.low (!%p139_p2), %vm442_vm0, %vm1296_vm1  ;;  %vm249_vm3 = vcmask (!%p139_p2), 220160   ;;  %vm895_vm4 = vcmask (!%p139_p2), 64512  }
   0x7   : > { %v1269_v5 = vpack.c.bf16 (!%p139_p2), %v241_v4, %v240_v2 }
   0x8   : > { %1266 = vmatprep.subr.bf16.mxu0 (!%p139_p2), %v1265_v3  ;;  %1275 = vmatprep.subr.bf16.mxu1 (!%p139_p2), %v1265_v3 }
   0x9   : > { %1268 = vmatpush3.bf16.msra.mxu0 (!%p139_p2), %v1265_v3  ;;  %1277 = vmatpush3.bf16.msra.mxu1 (!%p139_p2), %v1265_v3 }
   0xa   : > { %1271 = vmatprep.subr.msk.bf16.mxu0 (!%p139_p2), %vm1270_vm2, %v1269_v5  ;;  %1276 = vmatprep.subr.msk.bf16.mxu1 (!%p139_p2), %vm1270_vm2, %v1269_v5 }
   0xd   : > { %s1687_s20 = smov (!%p163_p3, %s1021_s20), 191  ;;  %1274 = vmatpush3.bf16.msk.msra.mxu0 %vm1270_vm2, %v1269_v5  ;;  %1278 = vmatpush3.bf16.msk.msra.mxu1 %vm1270_vm2, %v1269_v5 }
   0xe   : > { %s1022_s23 = sshll.u32 %s1687_s20, 3 }
   0xf   : > { %s1345_s26 = scalar_lea.vmem %s1682_s0, %s1022_s23  ;;  %s1487_s4 = scalar_lea.vmem %s1685_s3, %s1022_s23 }
  0x10   : > { %v174_v6 = vld [vmem:[%s1345_s26] sm:$0xff]  ;;  %v175_v8 = vld [vmem:[%s1345_s26 + $0x8] sm:$0xff]  ;;  %v176_v10 = vld [vmem:[%s1345_s26 + $0x10] sm:$0xff] }
  0x11   : > { %v206_v7 = vld [vmem:[%s1345_s26 + $0x100] sm:$0xff]  ;;  %v207_v9 = vld [vmem:[%s1345_s26 + $0x108] sm:$0xff]  ;;  %1169 = vmatprep.mubr.msk.f32.mxu0 %vm249_vm3, %v174_v6  ;;  %v208_v11 = vld [vmem:[%s1345_s26 + $0x110] sm:$0xff] }
  0x12   : > { %1217 = vmatprep.mubr.msk.f32.mxu1 %vm249_vm3, %v206_v7  ;;  %1170 = vmatmul.mubr.msk.f32.vlgmr.msra.gmra.mrb[0].mxu0 %vm249_vm3, %v175_v8  ;;  %v177_v12 = vld [vmem:[%s1345_s26 + $0x18] sm:$0xff]  ;;  %v178_v14 = vld [vmem:[%s1345_s26 + $0x20] sm:$0xff]  ;;  %v179_v16 = vld [vmem:[%s1345_s26 + $0x28] sm:$0xff] }
  0x13   : > { %1218 = vmatmul.mubr.msk.f32.vlgmr.msra.gmra.mrb[0].mxu1 %vm249_vm3, %v207_v9  ;;  %1172 = vmatprep.mubr.msk.f32.mxu0 %vm249_vm3, %v176_v10  ;;  %v209_v13 = vld [vmem:[%s1345_s26 + $0x118] sm:$0xff]  ;;  %v210_v15 = vld [vmem:[%s1345_s26 + $0x120] sm:$0xff]  ;;  %v211_v17 = vld [vmem:[%s1345_s26 + $0x128] sm:$0xff] }
  0x14   : > { %1220 = vmatprep.mubr.msk.f32.mxu1 %vm249_vm3, %v208_v11  ;;  %v180_v18 = vld [vmem:[%s1345_s26 + $0x30] sm:$0xff]  ;;  %v181_v20 = vld [vmem:[%s1345_s26 + $0x38] sm:$0xff]  ;;  %v182_v22 = vld [vmem:[%s1345_s26 + $0x40] sm:$0xff] }
  0x15   : > { %v212_v19 = vld [vmem:[%s1345_s26 + $0x130] sm:$0xff]  ;;  %v213_v21 = vld [vmem:[%s1345_s26 + $0x138] sm:$0xff]  ;;  %v214_v23 = vld [vmem:[%s1345_s26 + $0x140] sm:$0xff] }
  0x16   : > { %1173 = vmatmul.mubr.msk.f32.gmra.mrb[2].mxu0 %vm249_vm3, %v177_v12  ;;  %v183_v24 = vld [vmem:[%s1345_s26 + $0x48] sm:$0xff]  ;;  %v184_v26 = vld [vmem:[%s1345_s26 + $0x50] sm:$0xff]  ;;  %v185_v28 = vld [vmem:[%s1345_s26 + $0x58] sm:$0xff] }
  0x17   : > { %1221 = vmatmul.mubr.msk.f32.gmra.mrb[2].mxu1 %vm249_vm3, %v209_v13  ;;  %1175 = vmatprep.mubr.msk.f32.mxu0 %vm249_vm3, %v178_v14  ;;  %v215_v25 = vld [vmem:[%s1345_s26 + $0x148] sm:$0xff]  ;;  %v216_v27 = vld [vmem:[%s1345_s26 + $0x150] sm:$0xff]  ;;  %v217_v29 = vld [vmem:[%s1345_s26 + $0x158] sm:$0xff] }
  0x18   : > { %1223 = vmatprep.mubr.msk.f32.mxu1 %vm249_vm3, %v210_v15  ;;  %v186_v30 = vld [vmem:[%s1345_s26 + $0x60] sm:$0xff]  ;;  %v187_v32 = vld [vmem:[%s1345_s26 + $0x68] sm:$0xff]  ;;  %v188_v34 = vld [vmem:[%s1345_s26 + $0x70] sm:$0xff] }
  0x19   : > { %v218_v31 = vld [vmem:[%s1345_s26 + $0x160] sm:$0xff]  ;;  %v219_v33 = vld [vmem:[%s1345_s26 + $0x168] sm:$0xff]  ;;  %v220_v35 = vld [vmem:[%s1345_s26 + $0x170] sm:$0xff] }
  0x1a   : > { %1176 = vmatmul.mubr.msk.f32.gmra.mrb[4].mxu0 %vm249_vm3, %v179_v16  ;;  %v189_v36 = vld [vmem:[%s1345_s26 + $0x78] sm:$0xff]  ;;  %v190_v38 = vld [vmem:[%s1345_s26 + $0x80] sm:$0xff]  ;;  %v191_v40 = vld [vmem:[%s1345_s26 + $0x88] sm:$0xff] }
  0x1b   : > { %1224 = vmatmul.mubr.msk.f32.gmra.mrb[4].mxu1 %vm249_vm3, %v211_v17  ;;  %1178 = vmatprep.mubr.msk.f32.mxu0 %vm249_vm3, %v180_v18  ;;  %v221_v37 = vld [vmem:[%s1345_s26 + $0x178] sm:$0xff]  ;;  %v222_v39 = vld [vmem:[%s1345_s26 + $0x180] sm:$0xff]  ;;  %v223_v41 = vld [vmem:[%s1345_s26 + $0x188] sm:$0xff] }
  0x1c   : > { %1226 = vmatprep.mubr.msk.f32.mxu1 %vm249_vm3, %v212_v19  ;;  %v192_v42 = vld [vmem:[%s1345_s26 + $0x90] sm:$0xff]  ;;  %v193_v44 = vld [vmem:[%s1345_s26 + $0x98] sm:$0xff]  ;;  %v194_v46 = vld [vmem:[%s1345_s26 + $0xa0] sm:$0xff] }
  0x1d   : > { %v224_v43 = vld [vmem:[%s1345_s26 + $0x190] sm:$0xff]  ;;  %v225_v45 = vld [vmem:[%s1345_s26 + $0x198] sm:$0xff]  ;;  %v226_v47 = vld [vmem:[%s1345_s26 + $0x1a0] sm:$0xff] }
  0x1e   : > { %1179 = vmatmul.mubr.msk.f32.gmra.mrb[6].mxu0 %vm249_vm3, %v181_v20  ;;  %v195_v48 = vld [vmem:[%s1345_s26 + $0xa8] sm:$0xff]  ;;  %v196_v50 = vld [vmem:[%s1345_s26 + $0xb0] sm:$0xff]  ;;  %v197_v52 = vld [vmem:[%s1345_s26 + $0xb8] sm:$0xff] }
  0x1f   : > { %1227 = vmatmul.mubr.msk.f32.gmra.mrb[6].mxu1 %vm249_vm3, %v213_v21  ;;  %1181 = vmatprep.mubr.msk.f32.mxu0 %vm249_vm3, %v182_v22  ;;  %v227_v49 = vld [vmem:[%s1345_s26 + $0x1a8] sm:$0xff]  ;;  %v228_v51 = vld [vmem:[%s1345_s26 + $0x1b0] sm:$0xff]  ;;  %v229_v53 = vld [vmem:[%s1345_s26 + $0x1b8] sm:$0xff] }
  0x20   : > { %1229 = vmatprep.mubr.msk.f32.mxu1 %vm249_vm3, %v214_v23  ;;  %v198_v54 = vld [vmem:[%s1345_s26 + $0xc0] sm:$0xff]  ;;  %v199_v56 = vld [vmem:[%s1345_s26 + $0xc8] sm:$0xff]  ;;  %v200_v58 = vld [vmem:[%s1345_s26 + $0xd0] sm:$0xff] }
  0x21   : > { %v230_v55 = vld [vmem:[%s1345_s26 + $0x1c0] sm:$0xff]  ;;  %v231_v57 = vld [vmem:[%s1345_s26 + $0x1c8] sm:$0xff]  ;;  %v232_v59 = vld [vmem:[%s1345_s26 + $0x1d0] sm:$0xff] }
  0x22   : > { %1182 = vmatmul.mubr.msk.f32.gmra.mrb[8].mxu0 %vm249_vm3, %v183_v24  ;;  %v201_v60 = vld [vmem:[%s1345_s26 + $0xd8] sm:$0xff]  ;;  %v202_v62 = vld [vmem:[%s1345_s26 + $0xe0] sm:$0xff]  ;;  %v203_v0 = vld [vmem:[%s1345_s26 + $0xe8] sm:$0xff] }
  0x23   : > { %1230 = vmatmul.mubr.msk.f32.gmra.mrb[8].mxu1 %vm249_vm3, %v215_v25  ;;  %1184 = vmatprep.mubr.msk.f32.mxu0 %vm249_vm3, %v184_v26  ;;  %v233_v61 = vld [vmem:[%s1345_s26 + $0x1d8] sm:$0xff]  ;;  %v234_v63 = vld [vmem:[%s1345_s26 + $0x1e0] sm:$0xff]  ;;  %v235_v1 = vld [vmem:[%s1345_s26 + $0x1e8] sm:$0xff] }
  0x24   : > { %1232 = vmatprep.mubr.msk.f32.mxu1 %vm249_vm3, %v216_v27  ;;  %v204_v2 = vld [vmem:[%s1345_s26 + $0xf0] sm:$0xff]  ;;  %v205_v4 = vld [vmem:[%s1345_s26 + $0xf8] sm:$0xff]  ;;  %v1478_v6 = vld [vmem:[%s1684_s2] ss:$0 sm:$0xff] }
  0x25   : > { %v236_v3 = vld [vmem:[%s1345_s26 + $0x1f0] sm:$0xff]  ;;  %v237_v5 = vld [vmem:[%s1345_s26 + $0x1f8] sm:$0xff] }
  0x26   : > { %1185 = vmatmul.mubr.msk.f32.gmra.mrb[10].mxu0 %vm249_vm3, %v185_v28 }
  0x27   : > { %1233 = vmatmul.mubr.msk.f32.gmra.mrb[10].mxu1 %vm249_vm3, %v217_v29  ;;  %1187 = vmatprep.mubr.msk.f32.mxu0 %vm249_vm3, %v186_v30 }
  0x28   : > { %1235 = vmatprep.mubr.msk.f32.mxu1 %vm249_vm3, %v218_v31 }
  0x2a   : > { %1188 = vmatmul.mubr.msk.f32.gmra.mrb[12].mxu0 %vm249_vm3, %v187_v32 }
  0x2b   : > { %1236 = vmatmul.mubr.msk.f32.gmra.mrb[12].mxu1 %vm249_vm3, %v219_v33  ;;  %1190 = vmatprep.mubr.msk.f32.mxu0 %vm249_vm3, %v188_v34 }
  0x2c   : > { %1238 = vmatprep.mubr.msk.f32.mxu1 %vm249_vm3, %v220_v35 }
  0x2e   : > { %1191 = vmatmul.mubr.msk.f32.gmra.mrb[14].mxu0 %vm249_vm3, %v189_v36 }
  0x2f   : > { %1239 = vmatmul.mubr.msk.f32.gmra.mrb[14].mxu1 %vm249_vm3, %v221_v37  ;;  %1193 = vmatprep.mubr.msk.f32.mxu0 %vm249_vm3, %v190_v38 }
  0x30   : > { %1241 = vmatprep.mubr.msk.f32.mxu1 %vm249_vm3, %v222_v39 }
  0x32   : > { %1194 = vmatmul.mubr.msk.f32.gmra.mrb[16].mxu0 %vm249_vm3, %v191_v40 }
  0x33   : > { %1242 = vmatmul.mubr.msk.f32.gmra.mrb[16].mxu1 %vm249_vm3, %v223_v41  ;;  %1196 = vmatprep.mubr.msk.f32.mxu0 %vm249_vm3, %v192_v42 }
  0x34   : > { %1244 = vmatprep.mubr.msk.f32.mxu1 %vm249_vm3, %v224_v43 }
  0x36   : > { %1197 = vmatmul.mubr.msk.f32.gmra.mrb[18].mxu0 %vm249_vm3, %v193_v44 }
  0x37   : > { %1245 = vmatmul.mubr.msk.f32.gmra.mrb[18].mxu1 %vm249_vm3, %v225_v45  ;;  %1199 = vmatprep.mubr.msk.f32.mxu0 %vm249_vm3, %v194_v46 }
  0x38   : > { %1247 = vmatprep.mubr.msk.f32.mxu1 %vm249_vm3, %v226_v47 }
  0x3a   : > { %1200 = vmatmul.mubr.msk.f32.gmra.mrb[20].mxu0 %vm249_vm3, %v195_v48 }
  0x3b   : > { %1248 = vmatmul.mubr.msk.f32.gmra.mrb[20].mxu1 %vm249_vm3, %v227_v49  ;;  %1202 = vmatprep.mubr.msk.f32.mxu0 %vm249_vm3, %v196_v50 }
  0x3c   : > { %1250 = vmatprep.mubr.msk.f32.mxu1 %vm249_vm3, %v228_v51 }
  0x3e   : > { %1203 = vmatmul.mubr.msk.f32.gmra.mrb[22].mxu0 %vm249_vm3, %v197_v52 }
  0x3f   : > { %1251 = vmatmul.mubr.msk.f32.gmra.mrb[22].mxu1 %vm249_vm3, %v229_v53  ;;  %1205 = vmatprep.mubr.msk.f32.mxu0 %vm249_vm3, %v198_v54 }
  0x40   : > { %1253 = vmatprep.mubr.msk.f32.mxu1 %vm249_vm3, %v230_v55 }
  0x42   : > { %1206 = vmatmul.mubr.msk.f32.gmra.mrb[24].mxu0 %vm249_vm3, %v199_v56 }
  0x43   : > { %1254 = vmatmul.mubr.msk.f32.gmra.mrb[24].mxu1 %vm249_vm3, %v231_v57  ;;  %1208 = vmatprep.mubr.msk.f32.mxu0 %vm249_vm3, %v200_v58 }
  0x44   : > { %1256 = vmatprep.mubr.msk.f32.mxu1 %vm249_vm3, %v232_v59 }
  0x46   : > { %1209 = vmatmul.mubr.msk.f32.gmra.mrb[26].mxu0 %vm249_vm3, %v201_v60 }
  0x47   : > { %1257 = vmatmul.mubr.msk.f32.gmra.mrb[26].mxu1 %vm249_vm3, %v233_v61  ;;  %1211 = vmatprep.mubr.msk.f32.mxu0 %vm249_vm3, %v202_v62 }
  0x48   : > { %1259 = vmatprep.mubr.msk.f32.mxu1 %vm249_vm3, %v234_v63 }
  0x4a   : > { %1212 = vmatmul.mubr.msk.f32.gmra.mrb[28].mxu0 %vm249_vm3, %v203_v0 }
  0x4b   : > { %1260 = vmatmul.mubr.msk.f32.gmra.mrb[28].mxu1 %vm249_vm3, %v235_v1  ;;  %1214 = vmatprep.mubr.msk.f32.mxu0 %vm249_vm3, %v204_v2 }
  0x4c   : > { %1262 = vmatprep.mubr.msk.f32.mxu1 %vm249_vm3, %v236_v3 }
  0x4e   : > { %1215 = vmatmul.mubr.msk.f32.gmra.mrb[30].mxu0 %vm249_vm3, %v205_v4 }
  0x4f   : > { %1263 = vmatmul.mubr.msk.f32.gmra.mrb[30].mxu1 %vm249_vm3, %v237_v5 }
  0xe5   : > { %v1171_v7 = vpop.f32.mrb[0].mxu0 }
  0xe6   : > { %v1219_v8 = vpop.f32.mrb[0].mxu1  ;;  %v518_v9 = vadd.f32 %v1171_v7, %v1478_v6  ;;  %v512_v11 = vpop.f32.mrb[1].mxu0 }
  0xe7   : > { %v678_v10 = vadd.f32 %v1219_v8, %v1478_v6  ;;  %v672_v12 = vpop.f32.mrb[1].mxu1  ;;  %v513_v13 = vadd.f32 %v1478_v6, %v512_v11 }
  0xe8   : > { %v673_v14 = vadd.f32 %v1478_v6, %v672_v12  ;;  %v832_v15 = vmax.f32 %v518_v9, 0.0 }
  0xe9   : > { %v864_v16 = vmax.f32 %v678_v10, 0.0  ;;  %v831_v17 = vmax.f32 %v513_v13, 0.0  ;;  %v1174_v19 = vpop.f32.mrb[2].mxu0 }
  0xea   : > { %v863_v18 = vmax.f32 %v673_v14, 0.0  ;;  %v1222_v20 = vpop.f32.mrb[2].mxu1  ;;  %897 = vst.msk [vmem:[%s1487_s4 + $0x8] sm:$0xff] %vm895_vm4, %v832_v15  ;;  %v528_v21 = vadd.f32 %v1174_v19, %v1478_v6  ;;  %v522_v23 = vpop.f32.mrb[3].mxu0 }
  0xeb   : > { %929 = vst.msk [vmem:[%s1487_s4 + $0x108] sm:$0xff] %vm895_vm4, %v864_v16  ;;  %v688_v22 = vadd.f32 %v1222_v20, %v1478_v6  ;;  %v682_v24 = vpop.f32.mrb[3].mxu1  ;;  %896 = vst.msk [vmem:[%s1487_s4] sm:$0xff] %vm895_vm4, %v831_v17  ;;  %v523_v25 = vadd.f32 %v1478_v6, %v522_v23 }
  0xec   : > { %928 = vst.msk [vmem:[%s1487_s4 + $0x100] sm:$0xff] %vm895_vm4, %v863_v18  ;;  %v683_v26 = vadd.f32 %v1478_v6, %v682_v24  ;;  %v834_v27 = vmax.f32 %v528_v21, 0.0 }
  0xed   : > { %v866_v28 = vmax.f32 %v688_v22, 0.0  ;;  %v833_v29 = vmax.f32 %v523_v25, 0.0  ;;  %v1177_v31 = vpop.f32.mrb[4].mxu0 }
  0xee   : > { %v865_v30 = vmax.f32 %v683_v26, 0.0  ;;  %v1225_v32 = vpop.f32.mrb[4].mxu1  ;;  %899 = vst.msk [vmem:[%s1487_s4 + $0x18] sm:$0xff] %vm895_vm4, %v834_v27  ;;  %v538_v33 = vadd.f32 %v1177_v31, %v1478_v6  ;;  %v532_v35 = vpop.f32.mrb[5].mxu0 }
  0xef   : > { %931 = vst.msk [vmem:[%s1487_s4 + $0x118] sm:$0xff] %vm895_vm4, %v866_v28  ;;  %v698_v34 = vadd.f32 %v1225_v32, %v1478_v6  ;;  %v692_v36 = vpop.f32.mrb[5].mxu1  ;;  %898 = vst.msk [vmem:[%s1487_s4 + $0x10] sm:$0xff] %vm895_vm4, %v833_v29  ;;  %v533_v37 = vadd.f32 %v1478_v6, %v532_v35 }
  0xf0   : > { %930 = vst.msk [vmem:[%s1487_s4 + $0x110] sm:$0xff] %vm895_vm4, %v865_v30  ;;  %v693_v38 = vadd.f32 %v1478_v6, %v692_v36  ;;  %v836_v39 = vmax.f32 %v538_v33, 0.0 }
  0xf1   : > { %v868_v40 = vmax.f32 %v698_v34, 0.0  ;;  %v835_v41 = vmax.f32 %v533_v37, 0.0  ;;  %v1180_v43 = vpop.f32.mrb[6].mxu0 }
  0xf2   : > { %v867_v42 = vmax.f32 %v693_v38, 0.0  ;;  %v1228_v44 = vpop.f32.mrb[6].mxu1  ;;  %901 = vst.msk [vmem:[%s1487_s4 + $0x28] sm:$0xff] %vm895_vm4, %v836_v39  ;;  %v548_v45 = vadd.f32 %v1180_v43, %v1478_v6  ;;  %v542_v47 = vpop.f32.mrb[7].mxu0 }
  0xf3   : > { %933 = vst.msk [vmem:[%s1487_s4 + $0x128] sm:$0xff] %vm895_vm4, %v868_v40  ;;  %v708_v46 = vadd.f32 %v1228_v44, %v1478_v6  ;;  %v702_v48 = vpop.f32.mrb[7].mxu1  ;;  %900 = vst.msk [vmem:[%s1487_s4 + $0x20] sm:$0xff] %vm895_vm4, %v835_v41  ;;  %v543_v49 = vadd.f32 %v1478_v6, %v542_v47 }
  0xf4   : > { %932 = vst.msk [vmem:[%s1487_s4 + $0x120] sm:$0xff] %vm895_vm4, %v867_v42  ;;  %v703_v50 = vadd.f32 %v1478_v6, %v702_v48  ;;  %v838_v51 = vmax.f32 %v548_v45, 0.0 }
  0xf5   : > { %v870_v52 = vmax.f32 %v708_v46, 0.0  ;;  %v837_v53 = vmax.f32 %v543_v49, 0.0  ;;  %v1183_v55 = vpop.f32.mrb[8].mxu0 }
  0xf6   : > { %v869_v54 = vmax.f32 %v703_v50, 0.0  ;;  %v1231_v56 = vpop.f32.mrb[8].mxu1  ;;  %903 = vst.msk [vmem:[%s1487_s4 + $0x38] sm:$0xff] %vm895_vm4, %v838_v51  ;;  %v558_v57 = vadd.f32 %v1183_v55, %v1478_v6  ;;  %v552_v59 = vpop.f32.mrb[9].mxu0 }
  0xf7   : > { %935 = vst.msk [vmem:[%s1487_s4 + $0x138] sm:$0xff] %vm895_vm4, %v870_v52  ;;  %v718_v58 = vadd.f32 %v1231_v56, %v1478_v6  ;;  %v712_v60 = vpop.f32.mrb[9].mxu1  ;;  %902 = vst.msk [vmem:[%s1487_s4 + $0x30] sm:$0xff] %vm895_vm4, %v837_v53  ;;  %v553_v61 = vadd.f32 %v1478_v6, %v552_v59 }
  0xf8   : > { %934 = vst.msk [vmem:[%s1487_s4 + $0x130] sm:$0xff] %vm895_vm4, %v869_v54  ;;  %v713_v62 = vadd.f32 %v1478_v6, %v712_v60  ;;  %v840_v63 = vmax.f32 %v558_v57, 0.0 }
  0xf9   : > { %v872_v0 = vmax.f32 %v718_v58, 0.0  ;;  %v839_v1 = vmax.f32 %v553_v61, 0.0  ;;  %v1186_v3 = vpop.f32.mrb[10].mxu0 }
  0xfa   : > { %v871_v2 = vmax.f32 %v713_v62, 0.0  ;;  %v1234_v4 = vpop.f32.mrb[10].mxu1  ;;  %905 = vst.msk [vmem:[%s1487_s4 + $0x48] sm:$0xff] %vm895_vm4, %v840_v63  ;;  %v568_v5 = vadd.f32 %v1186_v3, %v1478_v6  ;;  %v562_v8 = vpop.f32.mrb[11].mxu0 }
  0xfb   : > { %937 = vst.msk [vmem:[%s1487_s4 + $0x148] sm:$0xff] %vm895_vm4, %v872_v0  ;;  %v728_v7 = vadd.f32 %v1234_v4, %v1478_v6  ;;  %v722_v9 = vpop.f32.mrb[11].mxu1  ;;  %904 = vst.msk [vmem:[%s1487_s4 + $0x40] sm:$0xff] %vm895_vm4, %v839_v1  ;;  %v563_v10 = vadd.f32 %v1478_v6, %v562_v8 }
  0xfc   : > { %936 = vst.msk [vmem:[%s1487_s4 + $0x140] sm:$0xff] %vm895_vm4, %v871_v2  ;;  %v723_v11 = vadd.f32 %v1478_v6, %v722_v9  ;;  %v842_v12 = vmax.f32 %v568_v5, 0.0 }
  0xfd   : > { %v874_v13 = vmax.f32 %v728_v7, 0.0  ;;  %v841_v14 = vmax.f32 %v563_v10, 0.0  ;;  %v1189_v16 = vpop.f32.mrb[12].mxu0 }
  0xfe   : > { %v873_v15 = vmax.f32 %v723_v11, 0.0  ;;  %v1237_v17 = vpop.f32.mrb[12].mxu1  ;;  %907 = vst.msk [vmem:[%s1487_s4 + $0x58] sm:$0xff] %vm895_vm4, %v842_v12  ;;  %v578_v18 = vadd.f32 %v1189_v16, %v1478_v6  ;;  %v572_v20 = vpop.f32.mrb[13].mxu0 }
  0xff   : > { %939 = vst.msk [vmem:[%s1487_s4 + $0x158] sm:$0xff] %vm895_vm4, %v874_v13  ;;  %v738_v19 = vadd.f32 %v1237_v17, %v1478_v6  ;;  %v732_v21 = vpop.f32.mrb[13].mxu1  ;;  %906 = vst.msk [vmem:[%s1487_s4 + $0x50] sm:$0xff] %vm895_vm4, %v841_v14  ;;  %v573_v22 = vadd.f32 %v1478_v6, %v572_v20 }
 0x100   : > { %938 = vst.msk [vmem:[%s1487_s4 + $0x150] sm:$0xff] %vm895_vm4, %v873_v15  ;;  %v733_v23 = vadd.f32 %v1478_v6, %v732_v21  ;;  %v844_v24 = vmax.f32 %v578_v18, 0.0 }
 0x101   : > { %v876_v25 = vmax.f32 %v738_v19, 0.0  ;;  %v843_v26 = vmax.f32 %v573_v22, 0.0  ;;  %v1192_v28 = vpop.f32.mrb[14].mxu0 }
 0x102   : > { %v875_v27 = vmax.f32 %v733_v23, 0.0  ;;  %v1240_v29 = vpop.f32.mrb[14].mxu1  ;;  %909 = vst.msk [vmem:[%s1487_s4 + $0x68] sm:$0xff] %vm895_vm4, %v844_v24  ;;  %v588_v30 = vadd.f32 %v1192_v28, %v1478_v6  ;;  %v582_v32 = vpop.f32.mrb[15].mxu0 }
 0x103   : > { %941 = vst.msk [vmem:[%s1487_s4 + $0x168] sm:$0xff] %vm895_vm4, %v876_v25  ;;  %v748_v31 = vadd.f32 %v1240_v29, %v1478_v6  ;;  %v742_v33 = vpop.f32.mrb[15].mxu1  ;;  %908 = vst.msk [vmem:[%s1487_s4 + $0x60] sm:$0xff] %vm895_vm4, %v843_v26  ;;  %v583_v34 = vadd.f32 %v1478_v6, %v582_v32 }
 0x104   : > { %940 = vst.msk [vmem:[%s1487_s4 + $0x160] sm:$0xff] %vm895_vm4, %v875_v27  ;;  %v743_v35 = vadd.f32 %v1478_v6, %v742_v33  ;;  %v846_v36 = vmax.f32 %v588_v30, 0.0 }
 0x105   : > { %v878_v37 = vmax.f32 %v748_v31, 0.0  ;;  %v845_v38 = vmax.f32 %v583_v34, 0.0  ;;  %v1195_v40 = vpop.f32.mrb[16].mxu0 }
 0x106   : > { %v877_v39 = vmax.f32 %v743_v35, 0.0  ;;  %v1243_v41 = vpop.f32.mrb[16].mxu1  ;;  %911 = vst.msk [vmem:[%s1487_s4 + $0x78] sm:$0xff] %vm895_vm4, %v846_v36  ;;  %v598_v42 = vadd.f32 %v1195_v40, %v1478_v6  ;;  %v592_v44 = vpop.f32.mrb[17].mxu0 }
 0x107   : > { %943 = vst.msk [vmem:[%s1487_s4 + $0x178] sm:$0xff] %vm895_vm4, %v878_v37  ;;  %v758_v43 = vadd.f32 %v1243_v41, %v1478_v6  ;;  %v752_v45 = vpop.f32.mrb[17].mxu1  ;;  %910 = vst.msk [vmem:[%s1487_s4 + $0x70] sm:$0xff] %vm895_vm4, %v845_v38  ;;  %v593_v46 = vadd.f32 %v1478_v6, %v592_v44 }
 0x108   : > { %942 = vst.msk [vmem:[%s1487_s4 + $0x170] sm:$0xff] %vm895_vm4, %v877_v39  ;;  %v753_v47 = vadd.f32 %v1478_v6, %v752_v45  ;;  %v848_v48 = vmax.f32 %v598_v42, 0.0 }
 0x109   : > { %v880_v49 = vmax.f32 %v758_v43, 0.0  ;;  %v847_v50 = vmax.f32 %v593_v46, 0.0  ;;  %v1198_v52 = vpop.f32.mrb[18].mxu0 }
 0x10a   : > { %v879_v51 = vmax.f32 %v753_v47, 0.0  ;;  %v1246_v53 = vpop.f32.mrb[18].mxu1  ;;  %913 = vst.msk [vmem:[%s1487_s4 + $0x88] sm:$0xff] %vm895_vm4, %v848_v48  ;;  %v608_v54 = vadd.f32 %v1198_v52, %v1478_v6  ;;  %v602_v56 = vpop.f32.mrb[19].mxu0 }
 0x10b   : > { %945 = vst.msk [vmem:[%s1487_s4 + $0x188] sm:$0xff] %vm895_vm4, %v880_v49  ;;  %v768_v55 = vadd.f32 %v1246_v53, %v1478_v6  ;;  %v762_v57 = vpop.f32.mrb[19].mxu1  ;;  %912 = vst.msk [vmem:[%s1487_s4 + $0x80] sm:$0xff] %vm895_vm4, %v847_v50  ;;  %v603_v58 = vadd.f32 %v1478_v6, %v602_v56 }
 0x10c   : > { %944 = vst.msk [vmem:[%s1487_s4 + $0x180] sm:$0xff] %vm895_vm4, %v879_v51  ;;  %v763_v59 = vadd.f32 %v1478_v6, %v762_v57  ;;  %v850_v60 = vmax.f32 %v608_v54, 0.0 }
 0x10d   : > { %v882_v61 = vmax.f32 %v768_v55, 0.0  ;;  %v849_v62 = vmax.f32 %v603_v58, 0.0  ;;  %v1201_v0 = vpop.f32.mrb[20].mxu0 }
 0x10e   : > { %v881_v63 = vmax.f32 %v763_v59, 0.0  ;;  %v1249_v1 = vpop.f32.mrb[20].mxu1  ;;  %915 = vst.msk [vmem:[%s1487_s4 + $0x98] sm:$0xff] %vm895_vm4, %v850_v60  ;;  %v618_v2 = vadd.f32 %v1201_v0, %v1478_v6  ;;  %v612_v4 = vpop.f32.mrb[21].mxu0 }
 0x10f   : > { %947 = vst.msk [vmem:[%s1487_s4 + $0x198] sm:$0xff] %vm895_vm4, %v882_v61  ;;  %v778_v3 = vadd.f32 %v1249_v1, %v1478_v6  ;;  %v772_v5 = vpop.f32.mrb[21].mxu1  ;;  %914 = vst.msk [vmem:[%s1487_s4 + $0x90] sm:$0xff] %vm895_vm4, %v849_v62  ;;  %v613_v7 = vadd.f32 %v1478_v6, %v612_v4 }
 0x110   : > { %946 = vst.msk [vmem:[%s1487_s4 + $0x190] sm:$0xff] %vm895_vm4, %v881_v63  ;;  %v773_v8 = vadd.f32 %v1478_v6, %v772_v5  ;;  %v852_v9 = vmax.f32 %v618_v2, 0.0 }
 0x111   : > { %v884_v10 = vmax.f32 %v778_v3, 0.0  ;;  %v851_v11 = vmax.f32 %v613_v7, 0.0  ;;  %v1204_v13 = vpop.f32.mrb[22].mxu0 }
 0x112   : > { %v883_v12 = vmax.f32 %v773_v8, 0.0  ;;  %v1252_v14 = vpop.f32.mrb[22].mxu1  ;;  %917 = vst.msk [vmem:[%s1487_s4 + $0xa8] sm:$0xff] %vm895_vm4, %v852_v9  ;;  %v628_v15 = vadd.f32 %v1204_v13, %v1478_v6  ;;  %v622_v17 = vpop.f32.mrb[23].mxu0 }
 0x113   : > { %949 = vst.msk [vmem:[%s1487_s4 + $0x1a8] sm:$0xff] %vm895_vm4, %v884_v10  ;;  %v788_v16 = vadd.f32 %v1252_v14, %v1478_v6  ;;  %v782_v18 = vpop.f32.mrb[23].mxu1  ;;  %916 = vst.msk [vmem:[%s1487_s4 + $0xa0] sm:$0xff] %vm895_vm4, %v851_v11  ;;  %v623_v19 = vadd.f32 %v1478_v6, %v622_v17 }
 0x114   : > { %948 = vst.msk [vmem:[%s1487_s4 + $0x1a0] sm:$0xff] %vm895_vm4, %v883_v12  ;;  %v783_v20 = vadd.f32 %v1478_v6, %v782_v18  ;;  %v854_v21 = vmax.f32 %v628_v15, 0.0 }
 0x115   : > { %v886_v22 = vmax.f32 %v788_v16, 0.0  ;;  %v853_v23 = vmax.f32 %v623_v19, 0.0  ;;  %v1207_v25 = vpop.f32.mrb[24].mxu0 }
 0x116   : > { %v885_v24 = vmax.f32 %v783_v20, 0.0  ;;  %v1255_v26 = vpop.f32.mrb[24].mxu1  ;;  %919 = vst.msk [vmem:[%s1487_s4 + $0xb8] sm:$0xff] %vm895_vm4, %v854_v21  ;;  %v638_v27 = vadd.f32 %v1207_v25, %v1478_v6  ;;  %v632_v29 = vpop.f32.mrb[25].mxu0 }
 0x117   : > { %951 = vst.msk [vmem:[%s1487_s4 + $0x1b8] sm:$0xff] %vm895_vm4, %v886_v22  ;;  %v798_v28 = vadd.f32 %v1255_v26, %v1478_v6  ;;  %v792_v30 = vpop.f32.mrb[25].mxu1  ;;  %918 = vst.msk [vmem:[%s1487_s4 + $0xb0] sm:$0xff] %vm895_vm4, %v853_v23  ;;  %v633_v31 = vadd.f32 %v1478_v6, %v632_v29 }
 0x118   : > { %950 = vst.msk [vmem:[%s1487_s4 + $0x1b0] sm:$0xff] %vm895_vm4, %v885_v24  ;;  %v793_v32 = vadd.f32 %v1478_v6, %v792_v30  ;;  %v856_v33 = vmax.f32 %v638_v27, 0.0 }
 0x119   : > { %v888_v34 = vmax.f32 %v798_v28, 0.0  ;;  %v855_v35 = vmax.f32 %v633_v31, 0.0  ;;  %v1210_v37 = vpop.f32.mrb[26].mxu0 }
 0x11a   : > { %v887_v36 = vmax.f32 %v793_v32, 0.0  ;;  %v1258_v38 = vpop.f32.mrb[26].mxu1  ;;  %921 = vst.msk [vmem:[%s1487_s4 + $0xc8] sm:$0xff] %vm895_vm4, %v856_v33  ;;  %v648_v39 = vadd.f32 %v1210_v37, %v1478_v6  ;;  %v642_v41 = vpop.f32.mrb[27].mxu0 }
 0x11b   : > { %953 = vst.msk [vmem:[%s1487_s4 + $0x1c8] sm:$0xff] %vm895_vm4, %v888_v34  ;;  %v808_v40 = vadd.f32 %v1258_v38, %v1478_v6  ;;  %v802_v42 = vpop.f32.mrb[27].mxu1  ;;  %920 = vst.msk [vmem:[%s1487_s4 + $0xc0] sm:$0xff] %vm895_vm4, %v855_v35  ;;  %v643_v43 = vadd.f32 %v1478_v6, %v642_v41 }
 0x11c   : > { %952 = vst.msk [vmem:[%s1487_s4 + $0x1c0] sm:$0xff] %vm895_vm4, %v887_v36  ;;  %v803_v44 = vadd.f32 %v1478_v6, %v802_v42  ;;  %v858_v45 = vmax.f32 %v648_v39, 0.0 }
 0x11d   : > { %v890_v46 = vmax.f32 %v808_v40, 0.0  ;;  %v857_v47 = vmax.f32 %v643_v43, 0.0  ;;  %v1213_v49 = vpop.f32.mrb[28].mxu0 }
 0x11e   : > { %v889_v48 = vmax.f32 %v803_v44, 0.0  ;;  %v1261_v50 = vpop.f32.mrb[28].mxu1  ;;  %923 = vst.msk [vmem:[%s1487_s4 + $0xd8] sm:$0xff] %vm895_vm4, %v858_v45  ;;  %v658_v51 = vadd.f32 %v1213_v49, %v1478_v6  ;;  %v652_v53 = vpop.f32.mrb[29].mxu0 }
 0x11f   : > { %955 = vst.msk [vmem:[%s1487_s4 + $0x1d8] sm:$0xff] %vm895_vm4, %v890_v46  ;;  %v818_v52 = vadd.f32 %v1261_v50, %v1478_v6  ;;  %v812_v54 = vpop.f32.mrb[29].mxu1  ;;  %922 = vst.msk [vmem:[%s1487_s4 + $0xd0] sm:$0xff] %vm895_vm4, %v857_v47  ;;  %v653_v55 = vadd.f32 %v1478_v6, %v652_v53 }
 0x120   : > { %954 = vst.msk [vmem:[%s1487_s4 + $0x1d0] sm:$0xff] %vm895_vm4, %v889_v48  ;;  %v813_v56 = vadd.f32 %v1478_v6, %v812_v54  ;;  %v860_v57 = vmax.f32 %v658_v51, 0.0 }
 0x121   : > { %v892_v58 = vmax.f32 %v818_v52, 0.0  ;;  %v859_v59 = vmax.f32 %v653_v55, 0.0  ;;  %v1216_v61 = vpop.f32.mrb[30].mxu0 }
 0x122   : > { %v891_v60 = vmax.f32 %v813_v56, 0.0  ;;  %v1264_v62 = vpop.f32.mrb[30].mxu1  ;;  %925 = vst.msk [vmem:[%s1487_s4 + $0xe8] sm:$0xff] %vm895_vm4, %v860_v57  ;;  %v668_v63 = vadd.f32 %v1216_v61, %v1478_v6  ;;  %v662_v1 = vpop.f32.mrb[31].mxu0 }
 0x123   : > { %957 = vst.msk [vmem:[%s1487_s4 + $0x1e8] sm:$0xff] %vm895_vm4, %v892_v58  ;;  %v828_v0 = vadd.f32 %v1264_v62, %v1478_v6  ;;  %v822_v2 = vpop.f32.mrb[31].mxu1  ;;  %924 = vst.msk [vmem:[%s1487_s4 + $0xe0] sm:$0xff] %vm895_vm4, %v859_v59  ;;  %v663_v3 = vadd.f32 %v1478_v6, %v662_v1 }
 0x124   : > { %956 = vst.msk [vmem:[%s1487_s4 + $0x1e0] sm:$0xff] %vm895_vm4, %v891_v60  ;;  %v823_v4 = vadd.f32 %v1478_v6, %v822_v2  ;;  %v862_v5 = vmax.f32 %v668_v63, 0.0 }
 0x125   : > { %v894_v7 = vmax.f32 %v828_v0, 0.0  ;;  %v861_v8 = vmax.f32 %v663_v3, 0.0 }
 0x126   : > { %v893_v9 = vmax.f32 %v823_v4, 0.0  ;;  %927 = vst.msk [vmem:[%s1487_s4 + $0xf8] sm:$0xff] %vm895_vm4, %v862_v5 }
 0x127   : > { %959 = vst.msk [vmem:[%s1487_s4 + $0x1f8] sm:$0xff] %vm895_vm4, %v894_v7  ;;  %926 = vst.msk [vmem:[%s1487_s4 + $0xf0] sm:$0xff] %vm895_vm4, %v861_v8 }
 0x128   : > { %958 = vst.msk [vmem:[%s1487_s4 + $0x1f0] sm:$0xff] %vm895_vm4, %v893_v9 }
 0x129 PF: > { %s13_s12 = sadd.s32 1, %s1294_s12  }
 0x12a   : > { %p10_p4 = scmp.ge.s32.totalorder %s13_s12, 5  }
 0x12c   :  { %12 = sbr.rel (!%p10_p4) target bundleno = 1 (0x1), region = 62 }

</bundles_post_ra>
